<compile_context>
chip_gen: v7x
topology: tpu7x:2x2x1
jax: 0.10.0
libtpu: 0.0.40
codegen_flags: <defaults>
</compile_context>

<pallas_src>
import jax
import jax.numpy as jnp
from jax.experimental import pallas as pl
from jax.experimental.pallas import tpu as pltpu

LANE = 128       # TPU lane width
EPI_ROWS = 128   # row sub-tile for the MLP epilogue (bounds f32 intermediates)


def _round_up(x, m):
    return ((x + m - 1) // m) * m


def _pad_to(x, rows, cols):
    """Zero-pad a 2-D array up to (rows, cols), preserving dtype."""
    out = jnp.zeros((rows, cols), x.dtype)
    return out.at[: x.shape[0], : x.shape[1]].set(x)


def _vmem_limit_bytes():
    """~3/4 of physical VMEM: ~96 MiB on v5e/v6e (128 MiB), ~48 MiB on v7x (64 MiB)."""
    try:
        cap = int(pltpu.get_tpu_info().vmem_capacity_bytes)
    except Exception:
        cap = 64 * 1024 * 1024  # conservative fallback = v7x physical size
    return cap * 3 // 4


# ---------------------------------------------------------------------------
# Pallas kernels
# ---------------------------------------------------------------------------
def gin_layer_kernel(a_ref, x_ref, w1_ref, b1_ref, w2_ref, b2_ref, o_ref, acc_ref):
    """One GINConv layer + outer ReLU, k-tiled aggregation:
         acc = sum_k A[i,k] @ x[k]          (bf16 x bf16 MXU, f32 VMEM accumulator)
         out = relu( relu(acc @ W1 + b1) @ W2 + b2 )   (epilogue on last k step,
                                                        chunked over row sub-tiles)
    """
    k = pl.program_id(1)

    @pl.when(k == 0)
    def _():
        acc_ref[...] = jnp.zeros_like(acc_ref)

    # Native bf16 MXU matmul; A is exact small integers in bf16, x/h stored bf16.
    acc_ref[...] += jnp.dot(a_ref[...], x_ref[...],
                            preferred_element_type=jnp.float32)

    @pl.when(k == pl.num_programs(1) - 1)
    def _():
        w1 = w1_ref[...]
        b1 = b1_ref[...]
        w2 = w2_ref[...]
        b2 = b2_ref[...]
        tm = acc_ref.shape[0]
        rows = min(EPI_ROWS, tm)
        # Chunk the epilogue so the (rows, C) f32 intermediates stay well inside the
        # vreg file even at tm=512 (avoids spill loads/stores).  The epilogue matmuls
        # are a negligible fraction of total compute, so they stay in f32 for accuracy.
        for c in range(tm // rows):
            r = c * rows
            agg = acc_ref[pl.ds(r, rows), :]
            h = jnp.dot(agg, w1, preferred_element_type=jnp.float32) + b1
            h = jnp.maximum(h, 0.0)
            h = jnp.dot(h, w2, preferred_element_type=jnp.float32) + b2
            o_ref[pl.ds(r, rows), :] = jnp.maximum(h, 0.0).astype(o_ref.dtype)


def pool_fc_kernel(p_ref, h_ref, wf_ref, bf_ref, o_ref, acc_ref):
    """global_mean_pool (P @ h, P rows already normalized, f32) fused with fc,
       k-tiled over nodes.  h streams in bf16 (halved HBM traffic)."""
    k = pl.program_id(0)

    @pl.when(k == 0)
    def _():
        acc_ref[...] = jnp.zeros_like(acc_ref)

    acc_ref[...] += jnp.dot(p_ref[...], h_ref[...].astype(jnp.float32),
                            preferred_element_type=jnp.float32)

    @pl.when(k == pl.num_programs(0) - 1)
    def _():
        o_ref[...] = jnp.dot(acc_ref[...], wf_ref[...],
                             preferred_element_type=jnp.float32) + bf_ref[...]


# ---------------------------------------------------------------------------
# pallas_call wrappers
# ---------------------------------------------------------------------------
def gin_layer(a_bf16, x_bf16, w1, b1, w2, b2, *, tm, tk):
    n_pad = a_bf16.shape[0]
    cp_in = x_bf16.shape[1]     # padded input-channel width (multiple of 128)
    cp_hid = w2.shape[1]        # padded hidden width (multiple of 128)
    grid = (n_pad // tm, n_pad // tk)

    return pl.pallas_call(
        gin_layer_kernel,
        out_shape=jax.ShapeDtypeStruct((n_pad, cp_hid), jnp.bfloat16),
        grid_spec=pltpu.PrefetchScalarGridSpec(
            num_scalar_prefetch=0,
            grid=grid,
            in_specs=[
                pl.BlockSpec((tm, tk), lambda i, k: (i, k)),          # A tile (bf16)
                pl.BlockSpec((tk, cp_in), lambda i, k: (k, 0)),       # x tile (bf16)
                pl.BlockSpec((cp_in, cp_hid), lambda i, k: (0, 0)),   # W1 (resident)
                pl.BlockSpec((1, cp_hid), lambda i, k: (0, 0)),       # b1
                pl.BlockSpec((cp_hid, cp_hid), lambda i, k: (0, 0)),  # W2 (resident)
                pl.BlockSpec((1, cp_hid), lambda i, k: (0, 0)),       # b2
            ],
            out_specs=pl.BlockSpec((tm, cp_hid), lambda i, k: (i, 0)),
            scratch_shapes=[pltpu.VMEM((tm, cp_in), jnp.float32)],
        ),
        compiler_params=pltpu.CompilerParams(
            dimension_semantics=("parallel", "arbitrary"),
            vmem_limit_bytes=_vmem_limit_bytes(),
        ),
    )(a_bf16, x_bf16, w1, b1, w2, b2)


def pool_fc(p, h, wf, bf, *, tk):
    g, n_pad = p.shape
    cp_hid = h.shape[1]
    cp_out = wf.shape[1]
    grid = (n_pad // tk,)

    return pl.pallas_call(
        pool_fc_kernel,
        out_shape=jax.ShapeDtypeStruct((g, cp_out), jnp.float32),
        grid_spec=pltpu.PrefetchScalarGridSpec(
            num_scalar_prefetch=0,
            grid=grid,
            in_specs=[
                pl.BlockSpec((g, tk), lambda k: (0, k)),             # P tile (f32)
                pl.BlockSpec((tk, cp_hid), lambda k: (k, 0)),        # h tile (bf16)
                pl.BlockSpec((cp_hid, cp_out), lambda k: (0, 0)),    # Wf (resident)
                pl.BlockSpec((1, cp_out), lambda k: (0, 0)),         # bf
            ],
            out_specs=pl.BlockSpec((g, cp_out), lambda k: (0, 0)),
            scratch_shapes=[pltpu.VMEM((g, cp_hid), jnp.float32)],
        ),
        compiler_params=pltpu.CompilerParams(
            dimension_semantics=("arbitrary",),
            vmem_limit_bytes=_vmem_limit_bytes(),
        ),
    )(p, h, wf, bf)


# ---------------------------------------------------------------------------
# GIN forward (glue in plain JAX, hot path in Pallas)
# ---------------------------------------------------------------------------
def gin_forward(params, x, edge_index, batch, num_graphs):
    n, c_in = x.shape
    eps = 0.0  # GINConv default (train_eps=False)

    n_pad = _round_up(n, 256)

    # Row tile: big enough to amortize per-grid-step overhead, but keep
    # n_pad // tm >= 2 so both v7x TensorCores get row tiles from the parallel axis.
    if n_pad % 512 == 0 and n_pad >= 1024:
        tm = 512
    elif n_pad >= 512:
        tm = 256
    else:
        tm = 128
    # k tile: largest 256-aligned value that divides n_pad.  Even at (tm,tk)=(512,2048)
    # the double-buffered bf16 A tile is only ~4 MiB — far below the VMEM budget.
    tk = 256
    for cand in (2048, 1024, 512):
        if n_pad % cand == 0:
            tk = cand
            break

    # Dense aggregation operator A, built DIRECTLY in bf16 (no f32 pass + cast):
    #   out[i] = (1+eps)*x[i] + sum_{src->i} x[src].
    # Entries are exact small integers, so bf16 is bit-exact for in-degree < 255.
    # Self-loops only on real nodes; padded rows/cols stay zero so fake nodes never
    # leak into real-node aggregations or the pooled means.
    src, dst = edge_index[0], edge_index[1]
    a = jnp.zeros((n_pad, n_pad), jnp.bfloat16).at[dst, src].add(1.0)
    idx = jnp.arange(n)
    a = a.at[idx, idx].add(1.0 + eps)

    cp_hid = _round_up(params["convs"][0][2].shape[1], LANE)

    # Node features in bf16: rows padded to n_pad, channels padded to 128-lane width.
    h = _pad_to(x.astype(jnp.bfloat16), n_pad, _round_up(c_in, LANE))

    for (w1, b1, w2, b2) in params["convs"]:
        cp_prev = h.shape[1]
        w1p = _pad_to(w1, cp_prev, cp_hid)
        b1p = _pad_to(b1, 1, cp_hid)
        w2p = _pad_to(w2, cp_hid, cp_hid)
        b2p = _pad_to(b2, 1, cp_hid)
        h = gin_layer(a, h, w1p, b1p, w2p, b2p, tm=tm, tk=tk)
        # dropout: identity in eval mode

    # Mean-pooling matrix P (f32 so 1/count is exact): (num_graphs, n_pad), rows sum
    # to 1 over each graph's real nodes; zero on padded nodes.
    onehot = (batch[None, :] == jnp.arange(num_graphs)[:, None]).astype(jnp.float32)
    counts = jnp.maximum(onehot.sum(axis=1, keepdims=True), 1.0)
    p = _pad_to(onehot / counts, num_graphs, n_pad)

    wf, bf = params["fc"]
    out_c = wf.shape[1]
    cp_out = _round_up(out_c, LANE)
    wfp = _pad_to(wf, cp_hid, cp_out)
    bfp = _pad_to(bf, 1, cp_out)

    out = pool_fc(p, h, wfp, bfp, tk=tk)
    return out[:, :out_c]


def gin_forward_ref(params, x, edge_index, batch, num_graphs):
    """Pure-JAX f32 reference for correctness checking."""
    n = x.shape[0]
    src, dst = edge_index[0], edge_index[1]
    adj = jnp.zeros((n, n), jnp.float32).at[dst, src].add(1.0)
    a = adj + jnp.eye(n, dtype=jnp.float32)
    h = x
    for (w1, b1, w2, b2) in params["convs"]:
        agg = a @ h
        h = jnp.maximum(jnp.maximum(agg @ w1 + b1, 0.0) @ w2 + b2, 0.0)
    onehot = (batch[None, :] == jnp.arange(num_graphs)[:, None]).astype(jnp.float32)
    counts = jnp.maximum(onehot.sum(axis=1, keepdims=True), 1.0)
    pooled = (onehot / counts) @ h
    wf, bf = params["fc"]
    return pooled @ wf + bf


# ---------------------------------------------------------------------------
# Deterministic parameter init (matches nn.Linear shapes; stored as (in, out))
# ---------------------------------------------------------------------------
def init_params(key, in_channels, hidden, out_channels, num_layers):
    def linear(key, fan_in, fan_out):
        kw, kb = jax.random.split(key)
        bound = 1.0 / jnp.sqrt(fan_in)
        w = jax.random.uniform(kw, (fan_in, fan_out), jnp.float32, -bound, bound)
        b = jax.random.uniform(kb, (1, fan_out), jnp.float32, -bound, bound)
        return w, b

    keys = jax.random.split(key, 2 * num_layers + 1)
    convs = []
    cin = in_channels
    for layer in range(num_layers):
        w1, b1 = linear(keys[2 * layer], cin, hidden)
        w2, b2 = linear(keys[2 * layer + 1], hidden, hidden)
        convs.append((w1, b1, w2, b2))
        cin = hidden
    wf, bf = linear(keys[-1], hidden, out_channels)
    return {"convs": convs, "fc": (wf, bf)}


if __name__ == "__main__":
    # Small synthetic graph batch
    N = 32            # total nodes
    E = 64            # edges
    IN_C = 8          # in_channels
    HID = 32          # hidden_channels
    OUT_C = 4         # out_channels
    LAYERS = 2        # num_layers
    GRAPHS = 2        # graphs in the batch

    key = jax.random.PRNGKey(0)
    kx, ke, kp = jax.random.split(key, 3)

    x = jax.random.normal(kx, (N, IN_C), jnp.float32)
    edge_index = jax.random.randint(ke, (2, E), 0, N, dtype=jnp.int32)
    # edge_attr is unused by this GIN forward pass (kept only for signature parity)
    edge_attr = jnp.zeros((E, 1), jnp.float32)
    batch = jnp.repeat(jnp.arange(GRAPHS, dtype=jnp.int32), N // GRAPHS)

    params = init_params(kp, IN_C, HID, OUT_C, LAYERS)

    out = gin_forward(params, x, edge_index, batch, GRAPHS)
    out = jax.block_until_ready(out)

    ref = jax.block_until_ready(gin_forward_ref(params, x, edge_index, batch, GRAPHS))
    assert out.shape == (GRAPHS, OUT_C)
    # Features/aggregation now run in bf16 (A is still exact); relaxed tolerance.
    assert jnp.allclose(out, ref, atol=5e-2, rtol=5e-2), "mismatch vs reference"

    print("KERNEL_OK")
</pallas_src>

<mosaic_0001>
module attributes {stable_mosaic.version = 11 : i64} {
  func.func @gin_layer_kernel(%arg0: i32, %arg1: i32, %arg2: memref<128x256xbf16, #tpu.memory_space<vmem>>, %arg3: memref<256x128xbf16, #tpu.memory_space<vmem>>, %arg4: memref<128x128xf32, #tpu.memory_space<vmem>>, %arg5: memref<1x128xf32, #tpu.memory_space<vmem>>, %arg6: memref<128x128xf32, #tpu.memory_space<vmem>>, %arg7: memref<1x128xf32, #tpu.memory_space<vmem>>, %arg8: memref<128x128xbf16, #tpu.memory_space<vmem>>, %arg9: memref<128x128xf32, #tpu.memory_space<vmem>>) attributes {dimension_semantics = [#tpu.dimension_semantics<parallel>, #tpu.dimension_semantics<arbitrary>], iteration_bounds = array<i64: 2, 1>, scalar_prefetch = 0 : i64, scratch_operands = 1 : i64, tpu.core_type = #tpu.core_type<tc>, window_params = [{transform_indices = @transform_0, window_bounds = array<i64: 128, 256>}, {transform_indices = @transform_1, window_bounds = array<i64: 256, 128>}, {pipeline_mode = #tpu.pipeline_mode<synchronous>, transform_indices = @transform_2, window_bounds = array<i64: 128, 128>}, {pipeline_mode = #tpu.pipeline_mode<synchronous>, transform_indices = @transform_3, window_bounds = array<i64: 1, 128>}, {pipeline_mode = #tpu.pipeline_mode<synchronous>, transform_indices = @transform_4, window_bounds = array<i64: 128, 128>}, {pipeline_mode = #tpu.pipeline_mode<synchronous>, transform_indices = @transform_5, window_bounds = array<i64: 1, 128>}, {transform_indices = @transform_6, window_bounds = array<i64: 128, 128>}]} {
    %c0_i32 = arith.constant 0 : i32
    %0 = arith.cmpi eq, %arg1, %c0_i32 : i32
    %1 = arith.extui %0 : i1 to i32
    %c0_i32_0 = arith.constant 0 : i32
    %2 = arith.cmpi ne, %1, %c0_i32_0 : i32
    scf.if %2 {
      %cst_10 = arith.constant 0.000000e+00 : f32
      %12 = vector.broadcast %cst_10 : f32 to vector<128x128xf32>
      %c0_11 = arith.constant 0 : index
      %c0_12 = arith.constant 0 : index
      %13 = vector.load %arg9[%c0_11, %c0_12] : memref<128x128xf32, #tpu.memory_space<vmem>>, vector<128x128xf32>
      tpu.vector_store %arg9[%c0_11, %c0_12], %12 {strides = array<i32>} : memref<128x128xf32, #tpu.memory_space<vmem>>, vector<128x128xf32>,
    } else {
    }
    %c0 = arith.constant 0 : index
    %c0_1 = arith.constant 0 : index
    %3 = vector.load %arg9[%c0, %c0_1] : memref<128x128xf32, #tpu.memory_space<vmem>>, vector<128x128xf32>
    %c0_2 = arith.constant 0 : index
    %c0_3 = arith.constant 0 : index
    %4 = vector.load %arg2[%c0_2, %c0_3] : memref<128x256xbf16, #tpu.memory_space<vmem>>, vector<128x256xbf16>
    %c0_4 = arith.constant 0 : index
    %c0_5 = arith.constant 0 : index
    %5 = vector.load %arg3[%c0_4, %c0_5] : memref<256x128xbf16, #tpu.memory_space<vmem>>, vector<256x128xbf16>
    %cst = arith.constant dense<0.000000e+00> : vector<128x128xf32>
    %6 = tpu.matmul %4, %5, %cst {dimension_numbers = #tpu.dot_dimension_numbers<[1], [0], [0], [1], [0, 0, 1, 1], [], []>} : vector<128x256xbf16>, vector<256x128xbf16>, vector<128x128xf32> -> vector<128x128xf32>
    %7 = arith.addf %3, %6 : vector<128x128xf32>
    %c0_6 = arith.constant 0 : index
    %c0_7 = arith.constant 0 : index
    %8 = vector.load %arg9[%c0_6, %c0_7] : memref<128x128xf32, #tpu.memory_space<vmem>>, vector<128x128xf32>
    tpu.vector_store %arg9[%c0_6, %c0_7], %7 {strides = array<i32>} : memref<128x128xf32, #tpu.memory_space<vmem>>, vector<128x128xf32>,
    %c0_i32_8 = arith.constant 0 : i32
    %9 = arith.cmpi eq, %arg1, %c0_i32_8 : i32
    %10 = arith.extui %9 : i1 to i32
    %c0_i32_9 = arith.constant 0 : i32
    %11 = arith.cmpi ne, %10, %c0_i32_9 : i32
    scf.if %11 {
      %c0_10 = arith.constant 0 : index
      %c0_11 = arith.constant 0 : index
      %12 = vector.load %arg4[%c0_10, %c0_11] : memref<128x128xf32, #tpu.memory_space<vmem>>, vector<128x128xf32>
      %c0_12 = arith.constant 0 : index
      %c0_13 = arith.constant 0 : index
      %13 = vector.load %arg5[%c0_12, %c0_13] : memref<1x128xf32, #tpu.memory_space<vmem>>, vector<1x128xf32>
      %c0_14 = arith.constant 0 : index
      %c0_15 = arith.constant 0 : index
      %14 = vector.load %arg6[%c0_14, %c0_15] : memref<128x128xf32, #tpu.memory_space<vmem>>, vector<128x128xf32>
      %c0_16 = arith.constant 0 : index
      %c0_17 = arith.constant 0 : index
      %15 = vector.load %arg7[%c0_16, %c0_17] : memref<1x128xf32, #tpu.memory_space<vmem>>, vector<1x128xf32>
      %c0_18 = arith.constant 0 : index
      %c0_19 = arith.constant 0 : index
      %16 = vector.load %arg9[%c0_18, %c0_19] : memref<128x128xf32, #tpu.memory_space<vmem>>, vector<128x128xf32>
      %cst_20 = arith.constant dense<0.000000e+00> : vector<128x128xf32>
      %17 = tpu.matmul %16, %12, %cst_20 {dimension_numbers = #tpu.dot_dimension_numbers<[1], [0], [0], [1], [0, 0, 1, 1], [], []>} : vector<128x128xf32>, vector<128x128xf32>, vector<128x128xf32> -> vector<128x128xf32>
      %18 = vector.broadcast %13 : vector<1x128xf32> to vector<128x128xf32>
      %19 = arith.addf %17, %18 : vector<128x128xf32>
      %cst_21 = arith.constant 0.000000e+00 : f32
      %20 = vector.broadcast %cst_21 : f32 to vector<128x128xf32>
      %21 = arith.maximumf %19, %20 : vector<128x128xf32>
      %cst_22 = arith.constant dense<0.000000e+00> : vector<128x128xf32>
      %22 = tpu.matmul %21, %14, %cst_22 {dimension_numbers = #tpu.dot_dimension_numbers<[1], [0], [0], [1], [0, 0, 1, 1], [], []>} : vector<128x128xf32>, vector<128x128xf32>, vector<128x128xf32> -> vector<128x128xf32>
      %23 = vector.broadcast %15 : vector<1x128xf32> to vector<128x128xf32>
      %24 = arith.addf %22, %23 : vector<128x128xf32>
      %cst_23 = arith.constant 0.000000e+00 : f32
      %25 = vector.broadcast %cst_23 : f32 to vector<128x128xf32>
      %26 = arith.maximumf %24, %25 : vector<128x128xf32>
      %27 = arith.truncf %26 : vector<128x128xf32> to vector<128x128xbf16>
      %c0_24 = arith.constant 0 : index
      %c0_25 = arith.constant 0 : index
      %28 = vector.load %arg8[%c0_24, %c0_25] : memref<128x128xbf16, #tpu.memory_space<vmem>>, vector<128x128xbf16>
      tpu.vector_store %arg8[%c0_24, %c0_25], %27 {strides = array<i32>} : memref<128x128xbf16, #tpu.memory_space<vmem>>, vector<128x128xbf16>,
    } else {
    }
    return
  }
  func.func @transform_0(%arg0: i32, %arg1: i32) -> (i32, i32) {
    %c0_i32 = arith.constant 0 : i32
    return %arg0, %arg1 : i32, i32
  }
  func.func @transform_1(%arg0: i32, %arg1: i32) -> (i32, i32) {
    %c0_i32 = arith.constant 0 : i32
    %c0_i32_0 = arith.constant 0 : i32
    return %arg1, %c0_i32 : i32, i32
  }
  func.func @transform_2(%arg0: i32, %arg1: i32) -> (i32, i32) {
    %c0_i32 = arith.constant 0 : i32
    %c0_i32_0 = arith.constant 0 : i32
    %c0_i32_1 = arith.constant 0 : i32
    return %c0_i32, %c0_i32_0 : i32, i32
  }
  func.func @transform_3(%arg0: i32, %arg1: i32) -> (i32, i32) {
    %c0_i32 = arith.constant 0 : i32
    %c0_i32_0 = arith.constant 0 : i32
    %c0_i32_1 = arith.constant 0 : i32
    return %c0_i32, %c0_i32_0 : i32, i32
  }
  func.func @transform_4(%arg0: i32, %arg1: i32) -> (i32, i32) {
    %c0_i32 = arith.constant 0 : i32
    %c0_i32_0 = arith.constant 0 : i32
    %c0_i32_1 = arith.constant 0 : i32
    return %c0_i32, %c0_i32_0 : i32, i32
  }
  func.func @transform_5(%arg0: i32, %arg1: i32) -> (i32, i32) {
    %c0_i32 = arith.constant 0 : i32
    %c0_i32_0 = arith.constant 0 : i32
    %c0_i32_1 = arith.constant 0 : i32
    return %c0_i32, %c0_i32_0 : i32, i32
  }
  func.func @transform_6(%arg0: i32, %arg1: i32) -> (i32, i32) {
    %c0_i32 = arith.constant 0 : i32
    %c0_i32_0 = arith.constant 0 : i32
    return %arg0, %c0_i32 : i32, i32
  }
}

</mosaic_0001>

<bundles_post_ra>
// kernel: tpu_custom_call.1
= control target key start
LH: loop header
LB: loop body
LE: loop exit
PB: predicated region body
PF: predicated region fallthrough
CT: control target
= control target key end

     0   :  { %s2506_s0 = inlined_call_operand.hbm [shape: bf16[256,256], index: 0, kind: input, shape index: {}]   ;;  %s2507_s1 = inlined_call_operand.hbm [shape: bf16[256,128], index: 1, kind: input, shape index: {}]   ;;  %s2508_s2 = inlined_call_operand.hbm [shape: f32[128,128], index: 2, kind: input, shape index: {}]   ;;  %s2509_s3 = inlined_call_operand.vmem [shape: f32[1,128], index: 3, kind: input, shape index: {}]   ;;  %s2510_s4 = inlined_call_operand.hbm [shape: f32[128,128], index: 4, kind: input, shape index: {}]   ;;  %s2511_s5 = inlined_call_operand.vmem [shape: f32[1,128], index: 5, kind: input, shape index: {}]   ;;  %s2512_s6 = inlined_call_operand.hbm [shape: bf16[256,128], index: 6, kind: output, shape index: {}]  }
   0x1   :  { %2519 = sst [smem:[#allocation18_spill]] %s2507_s1 }
   0x2   :  { %11 = vsyncpa [#allocation4], 0 }
   0x3   :  { %13 = vsyncpa [#allocation4 + $0x1], 0 }
   0x4   :  { %14 = vsyncpa [#allocation7], 0 }
   0x5   :  { %15 = vsyncpa [#allocation10], 0 }
   0x6   :  { %16 = vsyncpa [#allocation5], 0 }
   0x7   :  { %18 = vsyncpa [#allocation5 + $0x1], 0  ;;  %s2162_s21 = smov 0   ;;  %s2164_s22 = smov 0  }
   0x8   :  { %s2166_s23 = smov 0   ;;  %s2168_s24 = smov 0  }
   0x9   :  { %s2170_s25 = smov 0   ;;  %s2172_s26 = smov 0  }
   0xa LB: > { %2520 = sst [smem:[#allocation16_spill]] %s2094_s21  ;;  %s1329_s27 = sadd.s32 4294967295, %s2114_s26   ;;  %s2114_s26 = sphi %s2172_s26, %s24_s26   ;;  %s2110_s25 = sphi %s2170_s25, %s2545_s25   ;;  %s2106_s24 = sphi %s2168_s24, %s2544_s24   ;;  %s2102_s23 = sphi %s2166_s23, %s2543_s23   ;;  %s2098_s22 = sphi %s2164_s22, %s2542_s22   ;;  %s2094_s21 = sphi %s2162_s21, %s2541_s21  }
   0xb   : > { %s1330_s28 = sadd.s32 4294967294, %s2114_s26   ;;  %p58_p0 = scmp.ne.s32.totalorder %s2098_s22, %s2094_s21 }
   0xc   : > { %p2196_p1 = scmp.eq.s32.totalorder %s1329_s27, 0  ;;  %p2200_p2 = scmp.eq.s32.totalorder %s1329_s27, 1 }
   0xd   : > { %p198_p3 = scmp.eq.s32.totalorder %s1330_s28, 1  ;;  %p1331_p5 = scmp.ge.s32.totalorder %s2114_s26, 1 }
   0xe   : > { %s2521_s29 = scalar_select %p2196_p1, 1, 0 }
   0xf   : > { %s2522_s30 = scalar_select %p2200_p2, 1, 0 }
  0x10   : > { %p2206_p4 = por %p2196_p1, %p58_p0  ;;  %p2211_p6 = por %p198_p3, %p58_p0 }
  0x11   : > { %p205_p7 = scmp.lt.s32.totalorder %s2114_s26, 3  ;;  %s2116_s10 = smov [#allocation6]  }
  0x12   : > { %s2523_s7 = scalar_select %p2206_p4, 1, 0 }
  0x13   : > { %s2524_s8 = scalar_select %p2211_p6, 1, 0 }
  0x14   : > { %p2216_p8 = pnand %p1331_p5, %p205_p7  ;;  %s220_s11 = sshll.u32 %s2116_s10, 4  ;;  %s2220_s11 = int_to_ptr.vmem [resolvable:$true] %s220_s11 }
  0x15   : > { %2525 = sst [smem:[#allocation17_spill]] %s2524_s8  ;;  %s2117_s13 = smov [#allocation8]  }
  0x16   : > { %s2526_s9 = scalar_select %p2216_p8, 1, 0 }
  0x17   : > { %p1787_p9 = pneg %p2216_p8  ;;  %s233_s14 = sshll.u32 %s2117_s13, 4  ;;  %s2231_s14 = int_to_ptr.vmem [resolvable:$true] %s233_s14 }
  0x18   : > { %s2528_s1 = sld [smem:[#allocation18_spill]] }
  0x19   : > { %p2227_p11 = pnand %p1787_p9, %p2196_p1 }
  0x1b   : > { %p2241_p13 = pneg %p2227_p11 }
  0x1e   : > { %s1910_s17 = scalar_lea.hbm %s2528_s1, 2048 }
  0x1f   : > { %p1911_p12 = scmp.ne.s32.totalorder %s2528_s1, %s1910_s17  ;;  %p1917_p5 = scmp.lt.u32.totalorder %s1910_s17, %s2528_s1 }
  0x21   : > { %p1913_p0 = pnand %p2241_p13, %p1911_p12 }
  0x23   : > { %p1914_p3 = pneg %p1913_p0 }
  0x25   : > { %p1919_p7 = pnand %p1917_p5, %p1914_p3 }
  0x27   : > { %1922 = shalt.err (!%p1919_p7)
}
  0x28   : > { %s1923_s10 = scalar_lea.vmem %s2220_s11, 2048  ;;  %p1931_p1 = scmp.lt.s32.totalorder %s2220_s11, %s2220_s11 }
  0x29   : > { %p1924_p9 = scmp.ne.s32.totalorder %s2220_s11, %s1923_s10  ;;  %p1932_p4 = scmp.lt.s32.totalorder %s1923_s10, %s1923_s10 }
  0x2b   : > { %p1926_p10 = pnand %p1924_p9, %p2241_p13  ;;  %p1933_p12 = por %p1932_p4, %p1931_p1 }
  0x2d   : > { %p1927_p6 = pneg %p1926_p10 }
  0x2f   : > { %p1934_p0 = pnand %p1933_p12, %p1927_p6 }
  0x31   : > { %1937 = shalt.err (!%p1934_p0)
}
  0x32   : > { %s2118_s13 = smov 64   ;;  %s2119_s15 = smov 4  }
  0x33   : > { %1790 = dma.hbm_to_vmem [thread:$0]  (!%p2227_p11), %s2528_s1, 2048, %s2220_s11, [#allocation7], %s2118_s13, %s2118_s13, %s2119_s15  }
  0x34   : > { %s1938_s27 = scalar_lea.hbm %s2508_s2, 2048 }
  0x35   : > { %p1939_p1 = scmp.ne.s32.totalorder %s2508_s2, %s1938_s27  ;;  %p1945_p10 = scmp.lt.u32.totalorder %s1938_s27, %s2508_s2 }
  0x37   : > { %p1941_p4 = pnand %p1939_p1, %p2241_p13 }
  0x39   : > { %p1942_p6 = pneg %p1941_p4 }
  0x3b   : > { %p1947_p3 = pnand %p1945_p10, %p1942_p6 }
  0x3d   : > { %1950 = shalt.err (!%p1947_p3)
}
  0x3e   : > { %s1951_s11 = scalar_lea.vmem %s2231_s14, 2048  ;;  %p1959_p12 = scmp.lt.s32.totalorder %s2231_s14, %s2231_s14 }
  0x3f   : > { %p1952_p5 = scmp.ne.s32.totalorder %s2231_s14, %s1951_s11  ;;  %p1960_p0 = scmp.lt.s32.totalorder %s1951_s11, %s1951_s11 }
  0x41   : > { %p1954_p7 = pnand %p1952_p5, %p2241_p13  ;;  %p1961_p1 = por %p1960_p0, %p1959_p12 }
  0x43   : > { %p1955_p9 = pneg %p1954_p7 }
  0x45   : > { %p1962_p4 = pnand %p1961_p1, %p1955_p9 }
  0x47   : > { %1965 = shalt.err (!%p1962_p4)
}
  0x48   : > { %s2120_s8 = smov 128   ;;  %s2121_s21 = smov 8  }
  0x49   : > { %1793 = dma.hbm_to_vmem [thread:$0]  (!%p2227_p11), %s2508_s2, 2048, %s2231_s14, [#allocation7], %s2120_s8, %s2120_s8, %s2121_s21  }
  0x4a   : > { %s2122_s16 = smov [#allocation9]   ;;  %s1966_s27 = scalar_lea.hbm %s2510_s4, 2048 }
  0x4b   : > { %s249_s17 = sshll.u32 %s2122_s16, 4  ;;  %p1967_p6 = scmp.ne.s32.totalorder %s2510_s4, %s1966_s27  ;;  %s250_s17 = int_to_ptr.vmem [resolvable:$true] %s249_s17 }
  0x4c   : > { %p1973_p5 = scmp.lt.u32.totalorder %s1966_s27, %s2510_s4 }
  0x4d   : > { %p1969_p10 = pnand %p1967_p6, %p2241_p13 }
  0x4f   : > { %p1970_p3 = pneg %p1969_p10 }
  0x51   : > { %p1975_p7 = pnand %p1973_p5, %p1970_p3 }
  0x53   : > { %1978 = shalt.err (!%p1975_p7)
}
  0x54   : > { %s1979_s14 = scalar_lea.vmem %s250_s17, 2048  ;;  %p1987_p1 = scmp.lt.s32.totalorder %s250_s17, %s250_s17 }
  0x55   : > { %p1980_p9 = scmp.ne.s32.totalorder %s250_s17, %s1979_s14  ;;  %p1988_p4 = scmp.lt.s32.totalorder %s1979_s14, %s1979_s14 }
  0x57   : > { %p1982_p12 = pnand %p1980_p9, %p2241_p13  ;;  %p1989_p8 = por %p1988_p4, %p1987_p1 }
  0x59   : > { %p1983_p0 = pneg %p1982_p12 }
  0x5b   : > { %p1990_p2 = pnand %p1989_p8, %p1983_p0 }
  0x5d   : > { %1993 = shalt.err (!%p1990_p2)
}
  0x5e   : > { %1796 = dma.hbm_to_vmem [thread:$0]  (!%p2227_p11), %s2510_s4, 2048, %s250_s17, [#allocation10], %s2120_s8, %s2120_s8, %s2121_s21  }
  0x5f   : > { %s36_s20 = sadd.s32 1, %s2110_s25  ;;  %s45_s12 = sadd.s32 1, %s2102_s23 }
  0x60   : > { %p38_p2 = scmp.ge.s32.totalorder %s36_s20, 2  ;;  %p52_p8 = scmp.ne.s32.totalorder %s2102_s23, %s2098_s22 }
  0x61   : > { %p53_p13 = scmp.eq.s32.totalorder %s2114_s26, 0  ;;  %p2531_p10 = scmp.ne.s32.totalorder %s2522_s30, 0 }
  0x62   : > { %s2547_s20 = smov (%p38_p2, %s36_s20), 0  ;;  %p1808_p11 = scmp.lt.s32.totalorder %s2114_s26, 2 }
  0x63   : > { %p2316_p6 = por %p53_p13, %p52_p8  ;;  %p2322_p3 = por %p2531_p10, %p52_p8 }
  0x64   : > { %s40_s18 = ssub.s32 %s2110_s25, %s2547_s20  ;;  %s266_s17 = sand.u32 1, %s2102_s23  }
  0x65   : > { %p43_p5 = scmp.eq.s32.totalorder %s40_s18, 0  ;;  %s1336_s19 = sshll.u32 %s266_s17, 7 }
  0x66   : > { %s1402_s28 = sshll.u32 %s2110_s25, 11  ;;  %s270_s30 = scalar_lea.vmem [#allocation3], %s1336_s19 }
  0x67   : > { %s2331_s27 = scalar_select %p43_p5, %s2102_s23, %s45_s12  }
  0x68   : > { %s2337_s14 = scalar_lea.hbm %s2506_s0, %s1402_s28  ;;  %s280_s1 = sshll.u32 %s270_s30, 4  ;;  %s2339_s1 = int_to_ptr.vmem [resolvable:$true] %s280_s1 }
  0x69   : > { %p2343_p7 = pnand %p1808_p11, %p2316_p6  ;;  %s2347_s12 = scalar_lea.sflag [#allocation4], %s266_s17 }
  0x6a   : > { %s1994_s18 = scalar_lea.hbm %s2337_s14, 2048  ;;  %s1999_s15 = scalar_lea.hbm %s2506_s0, 4096 }
  0x6b   : > { %p1995_p9 = scmp.ne.s32.totalorder %s2337_s14, %s1994_s18  ;;  %p1996_p12 = pneg %p2343_p7 }
  0x6c   : > { %p2000_p4 = scmp.lt.u32.totalorder %s2337_s14, %s2506_s0  ;;  %p2001_p2 = scmp.lt.u32.totalorder %s1999_s15, %s1994_s18 }
  0x6d   : > { %p1997_p0 = pnand %p1996_p12, %p1995_p9  ;;  %p2003_p13 = scmp.lt.u32.totalorder %s1994_s18, %s2337_s14 }
  0x6e   : > { %p2002_p8 = por %p2001_p2, %p2000_p4 }
  0x6f   : > { %p1998_p1 = pneg %p1997_p0 }
  0x70   : > { %p2004_p6 = por %p2003_p13, %p2002_p8 }
  0x72   : > { %p2005_p10 = pnand %p2004_p6, %p1998_p1 }
  0x74   : > { %2008 = shalt.err (!%p2005_p10)
}
  0x75   : > { %s2009_s17 = scalar_lea.vmem %s2339_s1, 2048  ;;  %s2123_s30 = smov [#allocation3]  }
  0x76   : > { %p2010_p11 = scmp.ne.s32.totalorder %s2339_s1, %s2009_s17  ;;  %s2014_s19 = sshll.u32 %s2123_s30, 4  ;;  %s2015_s19 = int_to_ptr.vmem [resolvable:$false] %s2014_s19 }
  0x77   : > { %s2016_s28 = scalar_lea.vmem %s2015_s19, 4096  ;;  %p2017_p0 = scmp.lt.s32.totalorder %s2339_s1, %s2015_s19 }
  0x78   : > { %p2012_p5 = pnand %p2010_p11, %p1996_p12  ;;  %p2018_p4 = scmp.lt.s32.totalorder %s2016_s28, %s2009_s17 }
  0x7a   : > { %p2013_p9 = pneg %p2012_p5  ;;  %p2019_p2 = por %p2018_p4, %p2017_p0 }
  0x7c   : > { %p2020_p8 = pnand %p2019_p2, %p2013_p9 }
  0x7e   : > { %2023 = shalt.err (!%p2020_p8)
}
  0x7f   : > { %1800 = dma.hbm_to_vmem [thread:$0]  (!%p2343_p7), %s2337_s14, 2048, %s2339_s1, %s2347_s12, %s2120_s8, %s2120_s8, %s2121_s21  }
  0x80   : > { %p2534_p12 = scmp.ne.s32.totalorder %s2526_s9, 0 }
  0x81   : > { %s2381_s18 = sand.u32 (!%p2534_p12), 1, %s2098_s22   ;;  %p2535_p1 = scmp.ne.s32.totalorder (!%p2534_p12), %s2523_s7, 0 }
  0x82   : > { %292 = sbr.rel (%p2534_p12) target bundleno = 901 (0x385), region = 44  ;;  %s1341_s15 = sshll.u32 (!%p2534_p12), %s2381_s18, 7 }
  0x83   : > { %s295_s10 = scalar_lea.sflag (!%p2534_p12), [#allocation4], %s2381_s18  ;;  %s2385_s11 = scalar_lea.vmem (!%p2534_p12), [#allocation3], %s1341_s15 }
  0x89   : > { %2077 = dma.done.wait (%p2535_p1), %s295_s10, 2048  }
  0x8a   : > { %2079 = vsyncadd (%p2535_p1), %s295_s10, 4294965248  ;;  %p2536_p7 = scmp.ne.s32.totalorder %s2521_s29, 0 }
  0x8c   : > { %2081 = dma.done.wait (%p2536_p7), [#allocation7], 4096  }
  0x8d   : > { %2083 = vsyncadd (%p2536_p7), [#allocation7], 4294963200 }
  0x8e   : > { %2085 = dma.done.wait (%p2536_p7), [#allocation10], 2048  }
  0x8f   : > { %2087 = vsyncadd (%p2536_p7), [#allocation10], 4294965248  ;;  %v1870_v0 = vld [vmem:[#allocation6 + $0x40] sm:$0xff]   ;;  %v1872_v2 = vld [vmem:[#allocation6 + $0x48] sm:$0xff]   ;;  %s1345_s21 = sshll.u32 %s2381_s18, 6  ;;  %s1419_s13 = sshll.u32 %s2106_s24, 10 }
  0x90   : > { %v1871_v1 = vld [vmem:[#allocation6] sm:$0xff]   ;;  %1467 = vmatprep.subr.bf16.mxu0 %v1870_v0  ;;  %v1873_v3 = vld [vmem:[#allocation6 + $0x8] sm:$0xff]   ;;  %v1874_v4 = vld [vmem:[#allocation6 + $0x50] sm:$0xff]   ;;  %s2426_s14 = scalar_lea.vmem [#allocation11], %s1345_s21  ;;  %s2456_s30 = scalar_lea.hbm %s2512_s6, %s1419_s13 }
  0x91   : > { %1468 = vmatpush3.bf16.msra.mxu0 %v1871_v1  ;;  %v1875_v5 = vld [vmem:[#allocation6 + $0x10] sm:$0xff]   ;;  %v1876_v6 = vld [vmem:[#allocation6 + $0x58] sm:$0xff]   ;;  %v1878_v8 = vld [vmem:[#allocation6 + $0x60] sm:$0xff]   ;;  %s1214_s1 = sshll.u32 %s2426_s14, 4  ;;  %s1201_s19 = scalar_lea.sflag [#allocation5], %s2381_s18  ;;  %s2451_s1 = int_to_ptr.vmem [resolvable:$true] %s1214_s1 }
  0x92   : > { %1469 = vmatprep.subr.bf16.mxu0 %v1872_v2  ;;  %v1877_v7 = vld [vmem:[#allocation6 + $0x18] sm:$0xff]   ;;  %v1879_v9 = vld [vmem:[#allocation6 + $0x20] sm:$0xff]   ;;  %v1880_v10 = vld [vmem:[#allocation6 + $0x68] sm:$0xff]   ;;  %s2024_s28 = scalar_lea.vmem %s2451_s1, 1024  ;;  %s2124_s24 = smov [#allocation11]  }
  0x93   : > { %v1888_v11 = vld [vmem:[%s2385_s11 + $0x4] ss:$8 sps:$4 sm:$0xff]   ;;  %v1882_v13 = vld [vmem:[#allocation6 + $0x70] sm:$0xff]   ;;  %v1884_v15 = vld [vmem:[#allocation6 + $0x78] sm:$0xff]   ;;  %p2025_p13 = scmp.ne.s32.totalorder %s2451_s1, %s2024_s28  ;;  %s2028_s15 = sshll.u32 %s2124_s24, 4  ;;  %s2029_s15 = int_to_ptr.vmem [resolvable:$false] %s2028_s15 }
  0x94   : > { %v1881_v12 = vld [vmem:[#allocation6 + $0x28] sm:$0xff]   ;;  %636 = vmatprep.mubr.bf16.mxu0 %v1888_v11  ;;  %v1883_v14 = vld [vmem:[#allocation6 + $0x30] sm:$0xff]   ;;  %v1885_v16 = vld [vmem:[#allocation6 + $0x38] sm:$0xff]   ;;  %s2030_s10 = scalar_lea.vmem %s2029_s15, 2048  ;;  %p2031_p11 = scmp.lt.s32.totalorder %s2451_s1, %s2029_s15 }
  0x95   : > { %1470 = vmatpush3.bf16.msra.mxu0 %v1873_v3  ;;  %v736_v17 = vld [vmem:[#allocation8] sm:$0xff]  ;;  %v737_v18 = vld [vmem:[#allocation8 + $0x8] sm:$0xff]  ;;  %v738_v19 = vld [vmem:[#allocation8 + $0x10] sm:$0xff]  ;;  %p2026_p6 = pnand %p2025_p13, %p2322_p3  ;;  %p2032_p5 = scmp.lt.s32.totalorder %s2030_s10, %s2024_s28 }
  0x96   : > { %1471 = vmatprep.subr.bf16.mxu0 %v1874_v4  ;;  %v739_v20 = vld [vmem:[#allocation8 + $0x18] sm:$0xff]  ;;  %v1707_v21 = vpack.c.bf16 %v737_v18, %v736_v17  ;;  %v740_v23 = vld [vmem:[#allocation8 + $0x20] sm:$0xff]  ;;  %v741_v24 = vld [vmem:[#allocation8 + $0x28] sm:$0xff] }
  0x97   : > { %v1711_v22 = vpack.c.bf16 %v739_v20, %v738_v19  ;;  %v1886_v25 = vld [vmem:[%s2385_s11] ss:$8 sps:$4 sm:$0xff]   ;;  %v1889_v26 = vld [vmem:[%s2385_s11 + $0x14] ss:$8 sps:$4 sm:$0xff]   ;;  %v1715_v27 = vpack.c.bf16 %v741_v24, %v740_v23  ;;  %v1891_v33 = vld [vmem:[%s2385_s11 + $0x10] ss:$8 sps:$4 sm:$0xff]   ;;  %p2027_p10 = pneg %p2026_p6  ;;  %p2033_p9 = por %p2032_p5, %p2031_p11 }
  0x98   : > { %1708 = vmatprep.subr.bf16.mxu1 %v1707_v21  ;;  %v742_v28 = vld [vmem:[#allocation8 + $0x30] sm:$0xff]  ;;  %v743_v29 = vld [vmem:[#allocation8 + $0x38] sm:$0xff]  ;;  %v744_v31 = vld [vmem:[#allocation8 + $0x40] sm:$0xff] }
  0x99   : > { %1472 = vmatpush3.bf16.msra.mxu0 %v1875_v5  ;;  %1710 = vmatpush3.bf16.msra.mxu1 %v1707_v21  ;;  %v1719_v30 = vpack.c.bf16 %v743_v29, %v742_v28  ;;  %v745_v32 = vld [vmem:[#allocation8 + $0x48] sm:$0xff]  ;;  %v746_v36 = vld [vmem:[#allocation8 + $0x50] sm:$0xff]  ;;  %v747_v37 = vld [vmem:[#allocation8 + $0x58] sm:$0xff]  ;;  %p2034_p0 = pnand %p2033_p9, %p2027_p10 }
  0x9a   : > { %1473 = vmatprep.subr.bf16.mxu0 %v1876_v6  ;;  %1712 = vmatprep.subr.bf16.mxu1 %v1711_v22  ;;  %v1892_v34 = vld [vmem:[%s2385_s11 + $0x24] ss:$8 sps:$4 sm:$0xff]   ;;  %v1723_v35 = vpack.c.bf16 %v745_v32, %v744_v31  ;;  %v1727_v38 = vpack.c.bf16 %v747_v37, %v746_v36  ;;  %v1894_v41 = vld [vmem:[%s2385_s11 + $0x20] ss:$8 sps:$4 sm:$0xff]   ;;  %v1895_v42 = vld [vmem:[%s2385_s11 + $0x34] ss:$8 sps:$4 sm:$0xff]  }
  0x9b   : > { %v748_v39 = vld [vmem:[#allocation8 + $0x60] sm:$0xff]  ;;  %v749_v40 = vld [vmem:[#allocation8 + $0x68] sm:$0xff]  ;;  %v1897_v44 = vld [vmem:[%s2385_s11 + $0x30] ss:$8 sps:$4 sm:$0xff]  }
  0x9c   : > { %v1731_v43 = vpack.c.bf16 %v749_v40, %v748_v39  ;;  %v1898_v45 = vld [vmem:[%s2385_s11 + $0x44] ss:$8 sps:$4 sm:$0xff]   ;;  %v1900_v46 = vld [vmem:[%s2385_s11 + $0x40] ss:$8 sps:$4 sm:$0xff]   ;;  %v1901_v47 = vld [vmem:[%s2385_s11 + $0x54] ss:$8 sps:$4 sm:$0xff]  }
  0x9d   : > { %1474 = vmatpush3.bf16.msra.mxu0 %v1877_v7  ;;  %1714 = vmatpush3.bf16.msra.mxu1 %v1711_v22  ;;  %v1903_v48 = vld [vmem:[%s2385_s11 + $0x50] ss:$8 sps:$4 sm:$0xff]   ;;  %v1904_v49 = vld [vmem:[%s2385_s11 + $0x64] ss:$8 sps:$4 sm:$0xff]   ;;  %v1906_v50 = vld [vmem:[%s2385_s11 + $0x60] ss:$8 sps:$4 sm:$0xff]  }
  0x9e   : > { %1475 = vmatprep.subr.bf16.mxu0 %v1878_v8  ;;  %1716 = vmatprep.subr.bf16.mxu1 %v1715_v27  ;;  %v1907_v51 = vld [vmem:[%s2385_s11 + $0x74] ss:$8 sps:$4 sm:$0xff]   ;;  %v1909_v52 = vld [vmem:[%s2385_s11 + $0x70] ss:$8 sps:$4 sm:$0xff]   ;;  %v753_v56 = vld [vmem:[#allocation9] sm:$0xff] }
  0x9f   : > { %v750_v53 = vld [vmem:[#allocation8 + $0x70] sm:$0xff]  ;;  %v751_v54 = vld [vmem:[#allocation8 + $0x78] sm:$0xff]  ;;  %v754_v57 = vld [vmem:[#allocation9 + $0x8] sm:$0xff] }
  0xa0   : > { %v1735_v55 = vpack.c.bf16 %v751_v54, %v750_v53  ;;  %v1739_v58 = vpack.c.bf16 %v754_v57, %v753_v56  ;;  %v755_v61 = vld [vmem:[#allocation9 + $0x10] sm:$0xff]  ;;  %v756_v62 = vld [vmem:[#allocation9 + $0x18] sm:$0xff]  ;;  %v757_v4 = vld [vmem:[#allocation9 + $0x20] sm:$0xff] }
  0xa1   : > { %1476 = vmatpush3.bf16.msra.mxu0 %v1879_v9  ;;  %1718 = vmatpush3.bf16.msra.mxu1 %v1715_v27  ;;  %v1743_v3 = vpack.c.bf16 %v756_v62, %v755_v61  ;;  %v758_v5 = vld [vmem:[#allocation9 + $0x28] sm:$0xff]  ;;  %v759_v9 = vld [vmem:[#allocation9 + $0x30] sm:$0xff]  ;;  %v764_v22 = vld [vmem:[#allocation9 + $0x58] sm:$0xff] }
  0xa2   : > { %1477 = vmatprep.subr.bf16.mxu0 %v1880_v10  ;;  %1720 = vmatprep.subr.bf16.mxu1 %v1719_v30  ;;  %v1747_v7 = vpack.c.bf16 %v758_v5, %v757_v4  ;;  %v760_v10 = vld [vmem:[#allocation9 + $0x38] sm:$0xff]  ;;  %v762_v17 = vld [vmem:[#allocation9 + $0x48] sm:$0xff]  ;;  %v763_v21 = vld [vmem:[#allocation9 + $0x50] sm:$0xff] }
  0xa3   : > { %v1759_v27 = vpack.c.bf16 %v764_v22, %v763_v21  ;;  %v765_v28 = vld [vmem:[#allocation9 + $0x60] sm:$0xff]  ;;  %v766_v29 = vld [vmem:[#allocation9 + $0x68] sm:$0xff]  ;;  %v767_v61 = vld [vmem:[#allocation9 + $0x70] sm:$0xff] }
  0xa4   : > { %v1763_v31 = vpack.c.bf16 %v766_v29, %v765_v28  ;;  %v768_v62 = vld [vmem:[#allocation9 + $0x78] sm:$0xff] }
  0xa5   : > { %1478 = vmatpush3.bf16.msra.mxu0 %v1881_v12  ;;  %1722 = vmatpush3.bf16.msra.mxu1 %v1719_v30 }
  0xa6   : > { %1479 = vmatprep.subr.bf16.mxu0 %v1882_v13  ;;  %1724 = vmatprep.subr.bf16.mxu1 %v1723_v35 }
  0xa9   : > { %1480 = vmatpush3.bf16.msra.mxu0 %v1883_v14  ;;  %1726 = vmatpush3.bf16.msra.mxu1 %v1723_v35 }
  0xaa   : > { %1481 = vmatprep.subr.bf16.mxu0 %v1884_v15  ;;  %1728 = vmatprep.subr.bf16.mxu1 %v1727_v38  ;;  %v1751_v15 = vpack.c.bf16 %v760_v10, %v759_v9 }
  0xad   : > { %1482 = vmatpush3.bf16.msra.mxu0 %v1885_v16  ;;  %1730 = vmatpush3.bf16.msra.mxu1 %v1727_v38  ;;  %v761_v16 = vld [vmem:[#allocation9 + $0x40] sm:$0xff] }
  0xae   : > { %1732 = vmatprep.subr.bf16.mxu1 %v1731_v43  ;;  %v1755_v19 = vpack.c.bf16 %v762_v17, %v761_v16 }
  0xb0   : > { %637 = vmatmul.mubr.bf16.vlgmr.msra.gmra.mrb[0].mxu0 %v1886_v25 }
  0xb1   : > { %644 = vmatprep.mubr.bf16.mxu0 %v1889_v26  ;;  %1734 = vmatpush3.bf16.msra.mxu1 %v1731_v43 }
  0xb2   : > { %1736 = vmatprep.subr.bf16.mxu1 %v1735_v55 }
  0xb5   : > { %1738 = vmatpush3.bf16.msra.mxu1 %v1735_v55 }
  0xb6   : > { %1740 = vmatprep.subr.bf16.mxu1 %v1739_v58 }
  0xb8   : > { %645 = vmatmul.mubr.bf16.gmra.mrb[4].mxu0 %v1891_v33 }
  0xb9   : > { %652 = vmatprep.mubr.bf16.mxu0 %v1892_v34 }
  0xc0   : > { %653 = vmatmul.mubr.bf16.gmra.mrb[8].mxu0 %v1894_v41 }
  0xc1   : > { %660 = vmatprep.mubr.bf16.mxu0 %v1895_v42 }
  0xc8   : > { %661 = vmatmul.mubr.bf16.gmra.mrb[12].mxu0 %v1897_v44 }
  0xc9   : > { %668 = vmatprep.mubr.bf16.mxu0 %v1898_v45 }
  0xd0   : > { %669 = vmatmul.mubr.bf16.gmra.mrb[16].mxu0 %v1900_v46 }
  0xd1   : > { %676 = vmatprep.mubr.bf16.mxu0 %v1901_v47 }
  0xd8   : > { %677 = vmatmul.mubr.bf16.gmra.mrb[20].mxu0 %v1903_v48 }
  0xd9   : > { %684 = vmatprep.mubr.bf16.mxu0 %v1904_v49 }
  0xe0   : > { %685 = vmatmul.mubr.bf16.gmra.mrb[24].mxu0 %v1906_v50 }
  0xe1   : > { %692 = vmatprep.mubr.bf16.mxu0 %v1907_v51 }
  0xe8   : > { %693 = vmatmul.mubr.bf16.gmra.mrb[28].mxu0 %v1909_v52 }
 0x183   : > { %v1483_v59 = vpop.f32.mrb[0].mxu0 }
 0x184   : > { %v1484_v60 = vpop.f32.mrb[1].mxu0 }
 0x185   : > { %v1486_v63 = vpop.f32.mrb[2].mxu0  ;;  %v1485_v0 = vadd.f32 %v1484_v60, %v1483_v59 }
 0x186   : > { %v1487_v1 = vpop.f32.mrb[3].mxu0 }
 0x187   : > { %v1488_v2 = vadd.f32 %v1487_v1, %v1486_v63  ;;  %1627 = vmatprep.mubr.f32.mxu1 %v1485_v0  ;;  %v1767_v63 = vpack.c.bf16 %v768_v62, %v767_v61  ;;  %v1378_v0 = vld [vmem:[%s2509_s3] ss:$0 sm:$0xff] }
 0x189   : > { %1628 = vmatmul.mubr.f32.vlgmr.msra.gmra.mrb[0].mxu1 %v1488_v2 }
 0x18a   : > { %1742 = vmatpush3.bf16.msra.mxu1 %v1739_v58 }
 0x18b   : > { %v1489_v6 = vpop.f32.mrb[4].mxu0  ;;  %1744 = vmatprep.subr.bf16.mxu1 %v1743_v3 }
 0x18c   : > { %v1490_v8 = vpop.f32.mrb[5].mxu0 }
 0x18d   : > { %v1491_v11 = vadd.f32 %v1490_v8, %v1489_v6  ;;  %v1492_v12 = vpop.f32.mrb[6].mxu0 }
 0x18e   : > { %v1493_v13 = vpop.f32.mrb[7].mxu0  ;;  %1746 = vmatpush3.bf16.msra.mxu1 %v1743_v3 }
 0x18f   : > { %v1494_v14 = vadd.f32 %v1493_v13, %v1492_v12  ;;  %1630 = vmatprep.mubr.f32.mxu1 %v1491_v11  ;;  %1748 = vmatprep.subr.bf16.mxu1 %v1747_v7 }
 0x191   : > { %1631 = vmatmul.mubr.f32.gmra.mrb[2].mxu1 %v1494_v14 }
 0x192   : > { %1750 = vmatpush3.bf16.msra.mxu1 %v1747_v7 }
 0x193   : > { %v1495_v18 = vpop.f32.mrb[8].mxu0  ;;  %1752 = vmatprep.subr.bf16.mxu1 %v1751_v15 }
 0x194   : > { %v1496_v20 = vpop.f32.mrb[9].mxu0 }
 0x195   : > { %v1497_v23 = vadd.f32 %v1496_v20, %v1495_v18  ;;  %v1498_v24 = vpop.f32.mrb[10].mxu0 }
 0x196   : > { %v1499_v25 = vpop.f32.mrb[11].mxu0  ;;  %1754 = vmatpush3.bf16.msra.mxu1 %v1751_v15 }
 0x197   : > { %v1500_v26 = vadd.f32 %v1499_v25, %v1498_v24  ;;  %1633 = vmatprep.mubr.f32.mxu1 %v1497_v23  ;;  %1756 = vmatprep.subr.bf16.mxu1 %v1755_v19 }
 0x199   : > { %1634 = vmatmul.mubr.f32.gmra.mrb[4].mxu1 %v1500_v26 }
 0x19a   : > { %1758 = vmatpush3.bf16.msra.mxu1 %v1755_v19 }
 0x19b   : > { %v1501_v30 = vpop.f32.mrb[12].mxu0  ;;  %1760 = vmatprep.subr.bf16.mxu1 %v1759_v27 }
 0x19c   : > { %v1502_v32 = vpop.f32.mrb[13].mxu0 }
 0x19d   : > { %v1503_v33 = vadd.f32 %v1502_v32, %v1501_v30  ;;  %v1504_v34 = vpop.f32.mrb[14].mxu0 }
 0x19e   : > { %v1505_v35 = vpop.f32.mrb[15].mxu0  ;;  %1762 = vmatpush3.bf16.msra.mxu1 %v1759_v27 }
 0x19f   : > { %v1506_v36 = vadd.f32 %v1505_v35, %v1504_v34  ;;  %1636 = vmatprep.mubr.f32.mxu1 %v1503_v33  ;;  %1764 = vmatprep.subr.bf16.mxu1 %v1763_v31 }
 0x1a1   : > { %1637 = vmatmul.mubr.f32.gmra.mrb[6].mxu1 %v1506_v36 }
 0x1a2   : > { %1766 = vmatpush3.bf16.msra.mxu1 %v1763_v31 }
 0x1a3   : > { %v1507_v37 = vpop.f32.mrb[16].mxu0  ;;  %1768 = vmatprep.subr.bf16.mxu1 %v1767_v63 }
 0x1a4   : > { %v1508_v38 = vpop.f32.mrb[17].mxu0 }
 0x1a5   : > { %v1509_v39 = vadd.f32 %v1508_v38, %v1507_v37  ;;  %v1510_v40 = vpop.f32.mrb[18].mxu0 }
 0x1a6   : > { %v1511_v41 = vpop.f32.mrb[19].mxu0  ;;  %1770 = vmatpush3.bf16.msra.mxu1 %v1767_v63 }
 0x1a7   : > { %v1512_v42 = vadd.f32 %v1511_v41, %v1510_v40  ;;  %1639 = vmatprep.mubr.f32.mxu1 %v1509_v39 }
 0x1a9   : > { %1640 = vmatmul.mubr.f32.gmra.mrb[8].mxu1 %v1512_v42 }
 0x1ab   : > { %v1513_v43 = vpop.f32.mrb[20].mxu0 }
 0x1ac   : > { %v1514_v44 = vpop.f32.mrb[21].mxu0 }
 0x1ad   : > { %v1515_v45 = vadd.f32 %v1514_v44, %v1513_v43  ;;  %v1516_v46 = vpop.f32.mrb[22].mxu0 }
 0x1ae   : > { %v1517_v47 = vpop.f32.mrb[23].mxu0 }
 0x1af   : > { %v1518_v48 = vadd.f32 %v1517_v47, %v1516_v46  ;;  %1642 = vmatprep.mubr.f32.mxu1 %v1515_v45 }
 0x1b1   : > { %1643 = vmatmul.mubr.f32.gmra.mrb[10].mxu1 %v1518_v48 }
 0x1b3   : > { %v1519_v49 = vpop.f32.mrb[24].mxu0 }
 0x1b4   : > { %v1520_v50 = vpop.f32.mrb[25].mxu0 }
 0x1b5   : > { %v1521_v51 = vadd.f32 %v1520_v50, %v1519_v49  ;;  %v1522_v52 = vpop.f32.mrb[26].mxu0  ;;  %v2421_v49 = vld [vmem:[%s2511_s5] ss:$0 sm:$0xff] }
 0x1b6   : > { %v1523_v53 = vpop.f32.mrb[27].mxu0 }
 0x1b7   : > { %v1524_v54 = vadd.f32 %v1523_v53, %v1522_v52  ;;  %1645 = vmatprep.mubr.f32.mxu1 %v1521_v51 }
 0x1b9   : > { %1646 = vmatmul.mubr.f32.gmra.mrb[12].mxu1 %v1524_v54 }
 0x1bb   : > { %v1525_v55 = vpop.f32.mrb[28].mxu0 }
 0x1bc   : > { %v1526_v56 = vpop.f32.mrb[29].mxu0 }
 0x1bd   : > { %v1527_v57 = vadd.f32 %v1526_v56, %v1525_v55  ;;  %v1528_v58 = vpop.f32.mrb[30].mxu0 }
 0x1be   : > { %v1529_v59 = vpop.f32.mrb[31].mxu0 }
 0x1bf   : > { %v1530_v60 = vadd.f32 %v1529_v59, %v1528_v58  ;;  %1648 = vmatprep.mubr.f32.mxu1 %v1527_v57 }
 0x1c1   : > { %1649 = vmatmul.mubr.f32.gmra.mrb[14].mxu1 %v1530_v60 }
 0x25c   : > { %v1629_v1 = vpop.f32.mrb[0].mxu1 }
 0x25d   : > { %v864_v2 = vadd.f32 %v1629_v1, %v1378_v0  ;;  %v858_v3 = vpop.f32.mrb[1].mxu1 }
 0x25e   : > { %v859_v4 = vadd.f32 %v1378_v0, %v858_v3 }
 0x25f   : > { %v938_v6 = vmax.f32 %v864_v2, 0.0 }
 0x260   : > { %v937_v5 = vmax.f32 %v859_v4, 0.0 }
 0x262   : > { %1683 = vmatprep.mubr.f32.mxu1 %v937_v5 }
 0x263   : > { %1684 = vmatmul.mubr.f32.vlgmr.msra.gmra.mrb[16].mxu1 %v938_v6 }
 0x264   : > { %v1632_v7 = vpop.f32.mrb[2].mxu1 }
 0x265   : > { %v874_v8 = vadd.f32 %v1632_v7, %v1378_v0  ;;  %v868_v9 = vpop.f32.mrb[3].mxu1 }
 0x266   : > { %v869_v10 = vadd.f32 %v1378_v0, %v868_v9 }
 0x267   : > { %v940_v12 = vmax.f32 %v874_v8, 0.0 }
 0x268   : > { %v939_v11 = vmax.f32 %v869_v10, 0.0 }
 0x26a   : > { %1686 = vmatprep.mubr.f32.mxu1 %v939_v11 }
 0x26b   : > { %1687 = vmatmul.mubr.f32.gmra.mrb[18].mxu1 %v940_v12 }
 0x26c   : > { %v1635_v13 = vpop.f32.mrb[4].mxu1 }
 0x26d   : > { %v884_v14 = vadd.f32 %v1635_v13, %v1378_v0  ;;  %v878_v15 = vpop.f32.mrb[5].mxu1 }
 0x26e   : > { %v879_v16 = vadd.f32 %v1378_v0, %v878_v15 }
 0x26f   : > { %v942_v18 = vmax.f32 %v884_v14, 0.0 }
 0x270   : > { %v941_v17 = vmax.f32 %v879_v16, 0.0 }
 0x272   : > { %1689 = vmatprep.mubr.f32.mxu1 %v941_v17 }
 0x273   : > { %1690 = vmatmul.mubr.f32.gmra.mrb[20].mxu1 %v942_v18 }
 0x274   : > { %v1638_v19 = vpop.f32.mrb[6].mxu1 }
 0x275   : > { %v894_v20 = vadd.f32 %v1638_v19, %v1378_v0  ;;  %v888_v21 = vpop.f32.mrb[7].mxu1 }
 0x276   : > { %v889_v22 = vadd.f32 %v1378_v0, %v888_v21 }
 0x277   : > { %v944_v24 = vmax.f32 %v894_v20, 0.0 }
 0x278   : > { %v943_v23 = vmax.f32 %v889_v22, 0.0 }
 0x27a   : > { %1692 = vmatprep.mubr.f32.mxu1 %v943_v23 }
 0x27b   : > { %1693 = vmatmul.mubr.f32.gmra.mrb[22].mxu1 %v944_v24 }
 0x27c   : > { %v1641_v25 = vpop.f32.mrb[8].mxu1 }
 0x27d   : > { %v904_v26 = vadd.f32 %v1641_v25, %v1378_v0  ;;  %v898_v27 = vpop.f32.mrb[9].mxu1 }
 0x27e   : > { %v899_v28 = vadd.f32 %v1378_v0, %v898_v27 }
 0x27f   : > { %v946_v30 = vmax.f32 %v904_v26, 0.0 }
 0x280   : > { %v945_v29 = vmax.f32 %v899_v28, 0.0 }
 0x282   : > { %1695 = vmatprep.mubr.f32.mxu1 %v945_v29 }
 0x283   : > { %1696 = vmatmul.mubr.f32.gmra.mrb[24].mxu1 %v946_v30 }
 0x284   : > { %v1644_v31 = vpop.f32.mrb[10].mxu1 }
 0x285   : > { %v914_v32 = vadd.f32 %v1644_v31, %v1378_v0  ;;  %v908_v33 = vpop.f32.mrb[11].mxu1 }
 0x286   : > { %v909_v34 = vadd.f32 %v1378_v0, %v908_v33 }
 0x287   : > { %v948_v36 = vmax.f32 %v914_v32, 0.0 }
 0x288   : > { %v947_v35 = vmax.f32 %v909_v34, 0.0 }
 0x28a   : > { %1698 = vmatprep.mubr.f32.mxu1 %v947_v35 }
 0x28b   : > { %1699 = vmatmul.mubr.f32.gmra.mrb[26].mxu1 %v948_v36 }
 0x28c   : > { %v1647_v37 = vpop.f32.mrb[12].mxu1 }
 0x28d   : > { %v924_v38 = vadd.f32 %v1647_v37, %v1378_v0  ;;  %v918_v39 = vpop.f32.mrb[13].mxu1 }
 0x28e   : > { %v919_v40 = vadd.f32 %v1378_v0, %v918_v39 }
 0x28f   : > { %v950_v42 = vmax.f32 %v924_v38, 0.0 }
 0x290   : > { %v949_v41 = vmax.f32 %v919_v40, 0.0 }
 0x292   : > { %1701 = vmatprep.mubr.f32.mxu1 %v949_v41 }
 0x293   : > { %1702 = vmatmul.mubr.f32.gmra.mrb[28].mxu1 %v950_v42 }
 0x294   : > { %v1650_v43 = vpop.f32.mrb[14].mxu1 }
 0x295   : > { %v934_v44 = vadd.f32 %v1650_v43, %v1378_v0  ;;  %v928_v45 = vpop.f32.mrb[15].mxu1 }
 0x296   : > { %v929_v46 = vadd.f32 %v1378_v0, %v928_v45 }
 0x297   : > { %v952_v48 = vmax.f32 %v934_v44, 0.0 }
 0x298   : > { %v951_v47 = vmax.f32 %v929_v46, 0.0 }
 0x29a   : > { %1704 = vmatprep.mubr.f32.mxu1 %v951_v47 }
 0x29b   : > { %1705 = vmatmul.mubr.f32.gmra.mrb[30].mxu1 %v952_v48 }
 0x336   : > { %v1685_v50 = vpop.f32.mrb[16].mxu1 }
 0x337   : > { %v1031_v51 = vadd.f32 %v1685_v50, %v2421_v49  ;;  %v1025_v52 = vpop.f32.mrb[17].mxu1 }
 0x338   : > { %v1026_v53 = vadd.f32 %v2421_v49, %v1025_v52 }
 0x339   : > { %v1105_v54 = vmax.f32 %v1031_v51, 0.0 }
 0x33a   : > { %v1104_v55 = vmax.f32 %v1026_v53, 0.0 }
 0x33c   : > { %v1423_v56 = vpack.c.bf16 %v1105_v54, %v1104_v55 }
 0x33e   : > { %1424 = vst [vmem:[%s2426_s14] sm:$0xff] %v1423_v56   ;;  %v1688_v57 = vpop.f32.mrb[18].mxu1 }
 0x33f   : > { %v1041_v58 = vadd.f32 %v1688_v57, %v2421_v49  ;;  %v1035_v59 = vpop.f32.mrb[19].mxu1 }
 0x340   : > { %v1036_v60 = vadd.f32 %v2421_v49, %v1035_v59 }
 0x341   : > { %v1107_v61 = vmax.f32 %v1041_v58, 0.0 }
 0x342   : > { %v1106_v62 = vmax.f32 %v1036_v60, 0.0 }
 0x344   : > { %v1428_v63 = vpack.c.bf16 %v1107_v61, %v1106_v62 }
 0x346   : > { %1460 = vst [vmem:[%s2426_s14 + $0x8] sm:$0xff] %v1428_v63   ;;  %v1691_v0 = vpop.f32.mrb[20].mxu1 }
 0x347   : > { %v1051_v1 = vadd.f32 %v1691_v0, %v2421_v49  ;;  %v1045_v2 = vpop.f32.mrb[21].mxu1 }
 0x348   : > { %v1046_v3 = vadd.f32 %v2421_v49, %v1045_v2 }
 0x349   : > { %v1109_v4 = vmax.f32 %v1051_v1, 0.0 }
 0x34a   : > { %v1108_v5 = vmax.f32 %v1046_v3, 0.0 }
 0x34c   : > { %v1433_v6 = vpack.c.bf16 %v1109_v4, %v1108_v5 }
 0x34e   : > { %1461 = vst [vmem:[%s2426_s14 + $0x10] sm:$0xff] %v1433_v6   ;;  %v1694_v7 = vpop.f32.mrb[22].mxu1 }
 0x34f   : > { %v1061_v8 = vadd.f32 %v1694_v7, %v2421_v49  ;;  %v1055_v9 = vpop.f32.mrb[23].mxu1 }
 0x350   : > { %v1056_v10 = vadd.f32 %v2421_v49, %v1055_v9 }
 0x351   : > { %v1111_v11 = vmax.f32 %v1061_v8, 0.0 }
 0x352   : > { %v1110_v12 = vmax.f32 %v1056_v10, 0.0 }
 0x354   : > { %v1438_v13 = vpack.c.bf16 %v1111_v11, %v1110_v12 }
 0x356   : > { %1462 = vst [vmem:[%s2426_s14 + $0x18] sm:$0xff] %v1438_v13   ;;  %v1697_v14 = vpop.f32.mrb[24].mxu1 }
 0x357   : > { %v1071_v15 = vadd.f32 %v1697_v14, %v2421_v49  ;;  %v1065_v16 = vpop.f32.mrb[25].mxu1 }
 0x358   : > { %v1066_v17 = vadd.f32 %v2421_v49, %v1065_v16 }
 0x359   : > { %v1113_v18 = vmax.f32 %v1071_v15, 0.0 }
 0x35a   : > { %v1112_v19 = vmax.f32 %v1066_v17, 0.0 }
 0x35c   : > { %v1443_v20 = vpack.c.bf16 %v1113_v18, %v1112_v19 }
 0x35e   : > { %1463 = vst [vmem:[%s2426_s14 + $0x20] sm:$0xff] %v1443_v20   ;;  %v1700_v21 = vpop.f32.mrb[26].mxu1 }
 0x35f   : > { %v1081_v22 = vadd.f32 %v1700_v21, %v2421_v49  ;;  %v1075_v23 = vpop.f32.mrb[27].mxu1 }
 0x360   : > { %v1076_v24 = vadd.f32 %v2421_v49, %v1075_v23 }
 0x361   : > { %v1115_v25 = vmax.f32 %v1081_v22, 0.0 }
 0x362   : > { %v1114_v26 = vmax.f32 %v1076_v24, 0.0 }
 0x364   : > { %v1448_v27 = vpack.c.bf16 %v1115_v25, %v1114_v26 }
 0x366   : > { %1464 = vst [vmem:[%s2426_s14 + $0x28] sm:$0xff] %v1448_v27   ;;  %v1703_v28 = vpop.f32.mrb[28].mxu1 }
 0x367   : > { %v1091_v29 = vadd.f32 %v1703_v28, %v2421_v49  ;;  %v1085_v30 = vpop.f32.mrb[29].mxu1 }
 0x368   : > { %v1086_v31 = vadd.f32 %v2421_v49, %v1085_v30 }
 0x369   : > { %v1117_v32 = vmax.f32 %v1091_v29, 0.0 }
 0x36a   : > { %v1116_v33 = vmax.f32 %v1086_v31, 0.0 }
 0x36c   : > { %v1453_v34 = vpack.c.bf16 %v1117_v32, %v1116_v33 }
 0x36e   : > { %1465 = vst [vmem:[%s2426_s14 + $0x30] sm:$0xff] %v1453_v34   ;;  %v1706_v35 = vpop.f32.mrb[30].mxu1 }
 0x36f   : > { %v1101_v36 = vadd.f32 %v1706_v35, %v2421_v49  ;;  %v1095_v37 = vpop.f32.mrb[31].mxu1 }
 0x370   : > { %v1096_v38 = vadd.f32 %v2421_v49, %v1095_v37 }
 0x371   : > { %v1119_v39 = vmax.f32 %v1101_v36, 0.0 }
 0x372   : > { %v1118_v40 = vmax.f32 %v1096_v38, 0.0 }
 0x374   : > { %v1458_v41 = vpack.c.bf16 %v1119_v39, %v1118_v40 }
 0x376   : > { %1466 = vst [vmem:[%s2426_s14 + $0x38] sm:$0xff] %v1458_v41  }
 0x377   : > { %2037 = shalt.err (!%p2034_p0)
}
 0x378   : > { %s2038_s11 = scalar_lea.hbm %s2456_s30, 1024  ;;  %s2042_s9 = scalar_lea.hbm %s2512_s6, 2048 }
 0x379   : > { %p2039_p4 = scmp.ne.s32.totalorder %s2456_s30, %s2038_s11  ;;  %p2043_p12 = scmp.lt.u32.totalorder %s2456_s30, %s2512_s6 }
 0x37a   : > { %p2044_p1 = scmp.lt.u32.totalorder %s2042_s9, %s2038_s11  ;;  %p2046_p13 = scmp.lt.u32.totalorder %s2038_s11, %s2456_s30 }
 0x37b   : > { %p2040_p2 = pnand %p2039_p4, %p2322_p3 }
 0x37c   : > { %p2045_p7 = por %p2044_p1, %p2043_p12 }
 0x37d   : > { %p2041_p8 = pneg %p2040_p2 }
 0x37e   : > { %p2047_p6 = por %p2046_p13, %p2045_p7 }
 0x380   : > { %p2048_p10 = pnand %p2047_p6, %p2041_p8 }
 0x382   : > { %2051 = shalt.err (!%p2048_p10)
}
 0x383   : > { %s2125_s14 = smov 64   ;;  %s2126_s13 = smov 4  }
 0x384   : > { %1785 = dma.vmem_to_hbm [thread:$0]  (%p2322_p3), %s2451_s1, 1024, %s2456_s30, %s1201_s19, %s2125_s14, %s2125_s14, %s2126_s13  }
 0x385 PF: > { %s2537_s12 = sld [smem:[#allocation16_spill]]  ;;  %s2538_s17 = sld [smem:[#allocation17_spill]] }
 0x386   : > { %p2540_p5 = scmp.ge.s32.totalorder %s2114_s26, 2 }
 0x38b   : > { %s1229_s28 = sand.u32 1, %s2537_s12   ;;  %p2539_p11 = scmp.ne.s32.totalorder %s2538_s17, 0 }
 0x38c   : > { %s1230_s24 = scalar_lea.sflag [#allocation5], %s1229_s28 }
 0x38d   : > { %p1802_p9 = pnand %p2540_p5, %p2539_p11 }
 0x38f   : > { %2089 = dma.done.wait (!%p1802_p9), %s1230_s24, 1024  }
 0x390   : > { %2091 = vsyncadd (!%p1802_p9), %s1230_s24, 4294966272  ;;  %s24_s26 = sadd.s32 1, %s2114_s26   ;;  %s2541_s21 = smov %s2098_s22 }
 0x391   : > { %p21_p0 = scmp.ge.s32.totalorder %s24_s26, 4   ;;  %s2542_s22 = smov %s2102_s23 }
 0x392   : > { %s2543_s23 = smov %s2331_s27  ;;  %s2544_s24 = smov %s2110_s25 }
 0x393   : > { %s2545_s25 = smov %s2547_s20  ;;  %23 = sbr.rel (!%p21_p0) target bundleno = 10 (0xa), region = 110 }
 0x39a   :  { %1235 = vsyncpa [#allocation4], 1 }
 0x39b   :  { %1237 = vsyncpa [#allocation4 + $0x1], 1 }
 0x39c   :  { %1238 = vsyncpa [#allocation7], 1 }
 0x39d   :  { %1239 = vsyncpa [#allocation10], 1 }
 0x39e   :  { %1240 = vsyncpa [#allocation5], 1 }
 0x39f   :  { %1242 = vsyncpa [#allocation5 + $0x1], 1 }

</bundles_post_ra>
